<compile_context>
chip_gen: v7x
topology: tpu7x:2x2x1
jax: 0.10.0
libtpu: 0.0.40
codegen_flags: <defaults>
</compile_context>

<pallas_src>
import functools

import jax
import jax.numpy as jnp
from jax.experimental import pallas as pl
from jax.experimental.pallas import tpu as pltpu

_TILE_O = 128   # vocab tile width (lane-dense multiple of 128); raise for real vocab
_LANE = 128


def _round_up(x, m):
    return ((x + m - 1) // m) * m


def _luong_decoder_kernel(
    # scalar prefetch (SMEM)
    idx_ref,                      # [B] int32 token ids (clamped in the wrapper)
    # inputs
    embed_hbm,                    # [V, E]    HBM-resident embedding table (pl.ANY)
    hprev_ref,                    # [B, H]    previous hidden, f32 (VMEM resident)
    enc_ref,                      # [B, L, H] encoder outputs (batch-major), mxu dtype
    w_ih_ref,                     # [E, GP]   packed input->gate weights (r|z|n, zero pad)
    w_hh_ref,                     # [H, GP]   packed hidden->gate weights
    b_ih_ref,                     # [1, GP]   f32
    b_hh_ref,                     # [1, GP]   f32
    w_cat_ref,                    # [2H, H]   concat Linear weight
    b_cat_ref,                    # [1, H]    f32
    w_out_ref,                    # [H, TILE_O] current vocab tile of the projection
    b_out_ref,                    # [1, TILE_O] f32
    # outputs
    logits_ref,                   # [B, TILE_O] f32 logits tile (softmax in wrapper)
    hid_ref,                      # [B, H]      new hidden, f32
    # scratch (persist across vocab tiles)
    emb_buf,                      # [B, E]  gathered embedding rows (mxu dtype)
    emb_sem,                      # DMA semaphores, (B,)
    cat_ref,                      # [B, H]  cached tanh(concat Linear), mxu dtype
):
    j = pl.program_id(0)
    B, H = hprev_ref.shape
    cdt = w_ih_ref.dtype          # MXU operand dtype (bf16 by default, f32 optional)

    @pl.when(j == 0)
    def _gru_attention_concat():
        # --- embedding row gathers HBM -> VMEM; latency hidden behind h_prev matmul ---
        # TODO(synk): for large B replace the unrolled Python loop with a fori_loop gather.
        copies = []
        for b in range(B):
            cp = pltpu.make_async_copy(
                embed_hbm.at[pl.ds(idx_ref[b], 1), :],
                emb_buf.at[pl.ds(b, 1), :],
                emb_sem.at[b])
            cp.start()
            copies.append(cp)

        h_prev = hprev_ref[...]                                              # [B,H] f32
        gh = jnp.dot(h_prev.astype(cdt), w_hh_ref[...],
                     preferred_element_type=jnp.float32) + b_hh_ref[...]     # [B,GP]

        for cp in copies:
            cp.wait()
        emb = emb_buf[...]                                                   # [B,E] cdt
        gx = jnp.dot(emb, w_ih_ref[...],
                     preferred_element_type=jnp.float32) + b_ih_ref[...]     # [B,GP]

        # --- single-layer, single-step GRU (gate order r|z|n, static lane slices) ---
        r = jax.nn.sigmoid(gx[:, 0:H] + gh[:, 0:H])
        z = jax.nn.sigmoid(gx[:, H:2 * H] + gh[:, H:2 * H])
        n = jnp.tanh(gx[:, 2 * H:3 * H] + r * gh[:, 2 * H:3 * H])
        h_new = (1.0 - z) * n + z * h_prev                                   # [B,H] f32

        # --- 'dot' attention: VPU energies (no enc transpose), transpose-free context ---
        enc = enc_ref[...]                                                   # [B,L,H]
        scores = jnp.sum(h_new[:, None, :] * enc.astype(jnp.float32), axis=-1)  # [B,L]
        scores = scores - jnp.max(scores, axis=1, keepdims=True)
        e = jnp.exp(scores)
        den = jnp.sum(e, axis=1, keepdims=True)
        inv = pl.reciprocal(den, approx=True)          # EUP slot
        inv = inv * (2.0 - den * inv)                  # one Newton step -> ~f32 accuracy
        attn_w = e * inv                                                     # [B,L]
        context = jnp.einsum('bqk,bkh->bqh',
                             attn_w[:, None, :].astype(cdt), enc,
                             preferred_element_type=jnp.float32)[:, 0, :]    # [B,H]

        # --- concat -> Linear(2H,H) -> tanh; cache for the tiled output projection ---
        cat_in = jnp.concatenate([h_new, context], axis=1).astype(cdt)       # [B,2H]
        concat_out = jnp.tanh(jnp.dot(cat_in, w_cat_ref[...],
                                      preferred_element_type=jnp.float32)
                              + b_cat_ref[...])
        cat_ref[...] = concat_out.astype(cdt)
        hid_ref[...] = h_new

    # --- per-tile output projection; w_out tiles stream through double-buffered VMEM ---
    logits_ref[...] = (jnp.dot(cat_ref[...], w_out_ref[...],
                               preferred_element_type=jnp.float32) + b_out_ref[...])


def prepare_decoder_params(params, hidden_size, mxu_dtype=jnp.bfloat16):
    """One-time repack of module params into kernel-ready arrays.

    Expects PyTorch weights already transposed to (in, out):
      embedding [V,E], w_ih [E,3H], w_hh [H,3H] (gate order r|z|n), b_ih/b_hh [3H],
      w_concat [2H,H], b_concat [H], w_out [H,O], b_out [O].
    mxu_dtype: bf16 by default on all generations (halves weight bytes; f32 accumulation
    is kept in-kernel).  Biases stay f32.
    """
    H = hidden_size
    O = params["w_out"].shape[1]
    GP = _round_up(3 * H, _LANE)          # lane-dense packed gate width
    O_pad = _round_up(O, _TILE_O)         # lane-dense, tile-aligned vocab width
    cast = lambda w: jnp.asarray(w, mxu_dtype)

    def pad_cols(w, n):
        if w.shape[1] == n:
            return w
        return jnp.zeros((w.shape[0], n), w.dtype).at[:, :w.shape[1]].set(w)

    w_ih_p = pad_cols(params["w_ih"], GP)
    w_hh_p = pad_cols(params["w_hh"], GP)
    b_ih_p = pad_cols(params["b_ih"].reshape(1, -1).astype(jnp.float32), GP)
    b_hh_p = pad_cols(params["b_hh"].reshape(1, -1).astype(jnp.float32), GP)
    w_out_p = pad_cols(params["w_out"], O_pad)
    b_out_p = pad_cols(params["b_out"].reshape(1, -1).astype(jnp.float32), O_pad)

    return dict(
        embedding=cast(params["embedding"]),
        w_ih_p=cast(w_ih_p), w_hh_p=cast(w_hh_p),
        b_ih_p=b_ih_p, b_hh_p=b_hh_p,
        w_cat=cast(params["w_concat"]),
        b_cat=params["b_concat"].reshape(1, -1).astype(jnp.float32),
        w_out_p=cast(w_out_p), b_out_p=b_out_p,
    )


@functools.partial(jax.jit, static_argnames=("output_size",))
def luong_attn_decoder_forward(prepped, input_step, last_hidden, encoder_outputs,
                               *, output_size):
    """input_step [1,B] int32; last_hidden [1,B,H]; encoder_outputs [L,B,H]."""
    cdt = prepped["w_ih_p"].dtype
    V, E = prepped["embedding"].shape
    H = prepped["w_cat"].shape[1]
    GP = prepped["w_ih_p"].shape[1]
    O_pad = prepped["w_out_p"].shape[1]

    # clamp token ids: an OOB id would otherwise be a silent bad gather
    idx = jnp.clip(input_step.reshape(-1).astype(jnp.int32), 0, V - 1)        # [B]
    h_prev = last_hidden[0].astype(jnp.float32)                               # [B,H]
    B = h_prev.shape[0]
    L = encoder_outputs.shape[0]
    # batch-major encoder states; in a multi-step decode loop this transpose is hoisted
    enc_b = jnp.transpose(encoder_outputs, (1, 0, 2)).astype(cdt)             # [B,L,H]

    n_tiles = O_pad // _TILE_O

    def const(shape):  # whole-array resident block (fetched once, never re-DMA'd)
        rank = len(shape)
        return pl.BlockSpec(shape, lambda j, ids: (0,) * rank)

    grid_spec = pltpu.PrefetchScalarGridSpec(
        num_scalar_prefetch=1,                 # token ids -> SMEM
        grid=(n_tiles,),                       # pipelined vocab-projection tiles
        in_specs=[
            pl.BlockSpec(memory_space=pl.ANY),                   # embedding stays in HBM
            const((B, H)),                                       # h_prev
            const((B, L, H)),                                    # encoder outputs
            const((E, GP)),                                      # packed W_ih
            const((H, GP)),                                      # packed W_hh
            const((1, GP)),                                      # b_ih
            const((1, GP)),                                      # b_hh
            const((2 * H, H)),                                   # w_concat
            const((1, H)),                                       # b_concat
            pl.BlockSpec((H, _TILE_O), lambda j, ids: (0, j)),   # w_out tile (streamed)
            pl.BlockSpec((1, _TILE_O), lambda j, ids: (0, j)),   # b_out tile
        ],
        out_specs=(
            pl.BlockSpec((B, _TILE_O), lambda j, ids: (0, j)),   # logits tile (lane-dense)
            pl.BlockSpec((B, H), lambda j, ids: (0, 0)),         # new hidden (resident)
        ),
        scratch_shapes=[
            pltpu.VMEM((B, E), cdt),            # gathered embedding rows
            pltpu.SemaphoreType.DMA((B,)),      # per-row gather semaphores
            pltpu.VMEM((B, H), cdt),            # cached concat_out across vocab tiles
        ],
    )

    logits_pad, h_new = pl.pallas_call(
        _luong_decoder_kernel,
        out_shape=(jax.ShapeDtypeStruct((B, O_pad), jnp.float32),
                   jax.ShapeDtypeStruct((B, H), jnp.float32)),
        grid_spec=grid_spec,
        compiler_params=pltpu.CompilerParams(
            # vocab tiles must run after the j==0 GRU/attention stage -> "arbitrary"
            dimension_semantics=("arbitrary",),
            vmem_limit_bytes=32 * 1024 * 1024,
        ),
    )(idx, prepped["embedding"], h_prev, enc_b,
      prepped["w_ih_p"], prepped["w_hh_p"], prepped["b_ih_p"], prepped["b_hh_p"],
      prepped["w_cat"], prepped["b_cat"],
      prepped["w_out_p"], prepped["b_out_p"])

    # exact softmax over the real vocab (pad columns sliced off first)
    output = jax.nn.softmax(logits_pad[:, :output_size], axis=1)
    return output, h_new[None]                                    # ([B,O], [1,B,H])


def reference_forward(params, input_step, last_hidden, encoder_outputs):
    """Pure-JAX reference mirroring the PyTorch forward (dot attention, eval mode)."""
    emb = params["embedding"][input_step[0]]                      # [B, E]
    h_prev = last_hidden[0]                                       # [B, H]
    H = h_prev.shape[1]
    gx = emb @ params["w_ih"] + params["b_ih"]
    gh = h_prev @ params["w_hh"] + params["b_hh"]
    r = jax.nn.sigmoid(gx[:, :H] + gh[:, :H])
    z = jax.nn.sigmoid(gx[:, H:2 * H] + gh[:, H:2 * H])
    n = jnp.tanh(gx[:, 2 * H:] + r * gh[:, 2 * H:])
    h_new = (1.0 - z) * n + z * h_prev                            # [B, H]

    energies = jnp.sum(h_new[None, :, :] * encoder_outputs, axis=2)      # [L, B]
    attn_w = jax.nn.softmax(energies.T, axis=1)                          # [B, L]
    context = jnp.einsum("bl,lbh->bh", attn_w, encoder_outputs)          # [B, H]
    concat_out = jnp.tanh(jnp.concatenate([h_new, context], axis=1)
                          @ params["w_concat"] + params["b_concat"])
    output = jax.nn.softmax(concat_out @ params["w_out"] + params["b_out"], axis=1)
    return output, h_new[None]


if __name__ == "__main__":
    B, L, H, E = 2, 8, 32, 64           # batch, max_length, hidden, embed_dim
    V = O = 256                          # vocab (= output_size); 2 vocab tiles of 128

    key = jax.random.PRNGKey(0)
    ks = jax.random.split(key, 12)
    s = 0.1
    params = {
        "embedding": jax.random.normal(ks[0], (V, E), jnp.float32) * s,
        "w_ih":      jax.random.normal(ks[1], (E, 3 * H), jnp.float32) * s,
        "w_hh":      jax.random.normal(ks[2], (H, 3 * H), jnp.float32) * s,
        "b_ih":      jax.random.normal(ks[3], (3 * H,), jnp.float32) * s,
        "b_hh":      jax.random.normal(ks[4], (3 * H,), jnp.float32) * s,
        "w_concat":  jax.random.normal(ks[5], (2 * H, H), jnp.float32) * s,
        "b_concat":  jax.random.normal(ks[6], (H,), jnp.float32) * s,
        "w_out":     jax.random.normal(ks[7], (H, O), jnp.float32) * s,
        "b_out":     jax.random.normal(ks[8], (O,), jnp.float32) * s,
    }

    input_step = jnp.array([[3, 201]], dtype=jnp.int32)                       # [1, B]
    last_hidden = jax.random.normal(ks[9], (1, B, H), jnp.float32) * s        # [1, B, H]
    encoder_outputs = jax.random.normal(ks[10], (L, B, H), jnp.float32) * s   # [L, B, H]

    out_ref, hid_ref = reference_forward(params, input_step, last_hidden, encoder_outputs)

    # --- f32 MXU operands: tight numerical check of the fused kernel's math ---
    prep32 = prepare_decoder_params(params, hidden_size=H, mxu_dtype=jnp.float32)
    out32, hid32 = luong_attn_decoder_forward(
        prep32, input_step, last_hidden, encoder_outputs, output_size=O)
    jax.block_until_ready((out32, hid32))
    assert out32.shape == (B, O) and hid32.shape == (1, B, H)
    assert jnp.allclose(out32, out_ref, atol=5e-5, rtol=1e-4), \
        float(jnp.max(jnp.abs(out32 - out_ref)))
    assert jnp.allclose(hid32, hid_ref, atol=5e-5, rtol=1e-4), \
        float(jnp.max(jnp.abs(hid32 - hid_ref)))
    assert jnp.allclose(jnp.sum(out32, axis=1), 1.0, atol=1e-5)

    # --- bf16 MXU operands (default production config per perf review): looser check ---
    prep16 = prepare_decoder_params(params, hidden_size=H)        # mxu_dtype=bfloat16
    out16, hid16 = luong_attn_decoder_forward(
        prep16, input_step, last_hidden, encoder_outputs, output_size=O)
    jax.block_until_ready((out16, hid16))
    assert out16.shape == (B, O) and hid16.shape == (1, B, H)
    assert jnp.allclose(out16, out_ref, atol=1e-3), \
        float(jnp.max(jnp.abs(out16 - out_ref)))
    assert jnp.allclose(hid16, hid_ref, atol=2e-2), \
        float(jnp.max(jnp.abs(hid16 - hid_ref)))
    assert jnp.allclose(jnp.sum(out16, axis=1), 1.0, atol=1e-5)

    print("KERNEL_OK")
</pallas_src>

<mosaic_0001>
module attributes {stable_mosaic.version = 11 : i64} {
  func.func @_luong_decoder_kernel(%arg0: i32, %arg1: memref<2xi32, #tpu.memory_space<smem>>, %arg2: memref<256x64xf32, #tpu.memory_space<any>>, %arg3: memref<2x32xf32, #tpu.memory_space<vmem>>, %arg4: memref<2x8x32xf32, #tpu.memory_space<vmem>>, %arg5: memref<64x128xf32, #tpu.memory_space<vmem>>, %arg6: memref<32x128xf32, #tpu.memory_space<vmem>>, %arg7: memref<1x128xf32, #tpu.memory_space<vmem>>, %arg8: memref<1x128xf32, #tpu.memory_space<vmem>>, %arg9: memref<64x32xf32, #tpu.memory_space<vmem>>, %arg10: memref<1x32xf32, #tpu.memory_space<vmem>>, %arg11: memref<32x128xf32, #tpu.memory_space<vmem>>, %arg12: memref<1x128xf32, #tpu.memory_space<vmem>>, %arg13: memref<2x128xf32, #tpu.memory_space<vmem>>, %arg14: memref<2x32xf32, #tpu.memory_space<vmem>>, %arg15: memref<2x64xf32, #tpu.memory_space<vmem>>, %arg16: memref<2x!tpu.dma_semaphore, #tpu.memory_space<semaphore_mem>>, %arg17: memref<2x32xf32, #tpu.memory_space<vmem>>) attributes {dimension_semantics = [#tpu.dimension_semantics<arbitrary>], iteration_bounds = array<i64: 2>, scalar_prefetch = 1 : i64, scratch_operands = 3 : i64, tpu.core_type = #tpu.core_type<tc>, window_params = [{}, {pipeline_mode = #tpu.pipeline_mode<synchronous>, transform_indices = @transform_1, window_bounds = array<i64: 2, 32>}, {pipeline_mode = #tpu.pipeline_mode<synchronous>, transform_indices = @transform_2, window_bounds = array<i64: 2, 8, 32>}, {pipeline_mode = #tpu.pipeline_mode<synchronous>, transform_indices = @transform_3, window_bounds = array<i64: 64, 128>}, {pipeline_mode = #tpu.pipeline_mode<synchronous>, transform_indices = @transform_4, window_bounds = array<i64: 32, 128>}, {pipeline_mode = #tpu.pipeline_mode<synchronous>, transform_indices = @transform_5, window_bounds = array<i64: 1, 128>}, {pipeline_mode = #tpu.pipeline_mode<synchronous>, transform_indices = @transform_6, window_bounds = array<i64: 1, 128>}, {pipeline_mode = #tpu.pipeline_mode<synchronous>, transform_indices = @transform_7, window_bounds = array<i64: 64, 32>}, {pipeline_mode = #tpu.pipeline_mode<synchronous>, transform_indices = @transform_8, window_bounds = array<i64: 1, 32>}, {transform_indices = @transform_9, window_bounds = array<i64: 32, 128>}, {transform_indices = @transform_10, window_bounds = array<i64: 1, 128>}, {transform_indices = @transform_11, window_bounds = array<i64: 2, 128>}, {pipeline_mode = #tpu.pipeline_mode<synchronous>, transform_indices = @transform_12, window_bounds = array<i64: 2, 32>}]} {
    %c0_i32 = arith.constant 0 : i32
    %0 = arith.cmpi eq, %arg0, %c0_i32 : i32
    %1 = arith.extui %0 : i1 to i32
    %c0_i32_0 = arith.constant 0 : i32
    %2 = arith.cmpi ne, %1, %c0_i32_0 : i32
    scf.if %2 {
      %c0_8 = arith.constant 0 : index
      %10 = memref.load %arg1[%c0_8] : memref<2xi32, #tpu.memory_space<smem>>
      %c0_i32_9 = arith.constant 0 : i32
      %c0_i32_10 = arith.constant 0 : i32
      %11 = tpu.memref_slice %arg2[%10, %c0_i32_10] : memref<256x64xf32, #tpu.memory_space<any>> -> memref<1x64xf32, #tpu.memory_space<any>>
      %c0_i32_11 = arith.constant 0 : i32
      %c0_i32_12 = arith.constant 0 : i32
      %12 = tpu.memref_slice %arg15[%c0_i32_11, %c0_i32_12] : memref<2x64xf32, #tpu.memory_space<vmem>> -> memref<1x64xf32, #tpu.memory_space<vmem>>
      %13 = tpu.memref_slice %arg16[%c0_i32_9] : memref<2x!tpu.dma_semaphore, #tpu.memory_space<semaphore_mem>> -> memref<1x!tpu.dma_semaphore, #tpu.memory_space<semaphore_mem>>
      %14 = tpu.memref_squeeze %13 : memref<1x!tpu.dma_semaphore, #tpu.memory_space<semaphore_mem>> -> memref<!tpu.dma_semaphore, #tpu.memory_space<semaphore_mem>>
      tpu.enqueue_dma source(%11 : memref<1x64xf32, #tpu.memory_space<any>>) target(%12 : memref<1x64xf32, #tpu.memory_space<vmem>>) target_semaphore(%14 : memref<!tpu.dma_semaphore, #tpu.memory_space<semaphore_mem>>)
      %c1 = arith.constant 1 : index
      %15 = memref.load %arg1[%c1] : memref<2xi32, #tpu.memory_space<smem>>
      %c1_i32 = arith.constant 1 : i32
      %c0_i32_13 = arith.constant 0 : i32
      %16 = tpu.memref_slice %arg2[%15, %c0_i32_13] : memref<256x64xf32, #tpu.memory_space<any>> -> memref<1x64xf32, #tpu.memory_space<any>>
      %c1_i32_14 = arith.constant 1 : i32
      %c0_i32_15 = arith.constant 0 : i32
      %17 = tpu.memref_slice %arg15[%c1_i32_14, %c0_i32_15] : memref<2x64xf32, #tpu.memory_space<vmem>> -> memref<1x64xf32, #tpu.memory_space<vmem>>
      %18 = tpu.memref_slice %arg16[%c1_i32] : memref<2x!tpu.dma_semaphore, #tpu.memory_space<semaphore_mem>> -> memref<1x!tpu.dma_semaphore, #tpu.memory_space<semaphore_mem>>
      %19 = tpu.memref_squeeze %18 : memref<1x!tpu.dma_semaphore, #tpu.memory_space<semaphore_mem>> -> memref<!tpu.dma_semaphore, #tpu.memory_space<semaphore_mem>>
      tpu.enqueue_dma source(%16 : memref<1x64xf32, #tpu.memory_space<any>>) target(%17 : memref<1x64xf32, #tpu.memory_space<vmem>>) target_semaphore(%19 : memref<!tpu.dma_semaphore, #tpu.memory_space<semaphore_mem>>)
      %c0_16 = arith.constant 0 : index
      %c0_17 = arith.constant 0 : index
      %20 = vector.load %arg3[%c0_16, %c0_17] : memref<2x32xf32, #tpu.memory_space<vmem>>, vector<2x32xf32>
      %c0_18 = arith.constant 0 : index
      %c0_19 = arith.constant 0 : index
      %21 = vector.load %arg6[%c0_18, %c0_19] : memref<32x128xf32, #tpu.memory_space<vmem>>, vector<32x128xf32>
      %cst_20 = arith.constant dense<0.000000e+00> : vector<2x128xf32>
      %22 = tpu.matmul %20, %21, %cst_20 {dimension_numbers = #tpu.dot_dimension_numbers<[1], [0], [0], [1], [0, 0, 1, 1], [], []>} : vector<2x32xf32>, vector<32x128xf32>, vector<2x128xf32> -> vector<2x128xf32>
      %c0_21 = arith.constant 0 : index
      %c0_22 = arith.constant 0 : index
      %23 = vector.load %arg8[%c0_21, %c0_22] : memref<1x128xf32, #tpu.memory_space<vmem>>, vector<1x128xf32>
      %24 = vector.broadcast %23 : vector<1x128xf32> to vector<2x128xf32>
      %25 = arith.addf %22, %24 : vector<2x128xf32>
      %c0_i32_23 = arith.constant 0 : i32
      %c0_i32_24 = arith.constant 0 : i32
      %26 = tpu.memref_slice %arg2[%10, %c0_i32_24] : memref<256x64xf32, #tpu.memory_space<any>> -> memref<1x64xf32, #tpu.memory_space<any>>
      %c0_i32_25 = arith.constant 0 : i32
      %c0_i32_26 = arith.constant 0 : i32
      %27 = tpu.memref_slice %arg15[%c0_i32_25, %c0_i32_26] : memref<2x64xf32, #tpu.memory_space<vmem>> -> memref<1x64xf32, #tpu.memory_space<vmem>>
      %28 = tpu.memref_slice %arg16[%c0_i32_23] : memref<2x!tpu.dma_semaphore, #tpu.memory_space<semaphore_mem>> -> memref<1x!tpu.dma_semaphore, #tpu.memory_space<semaphore_mem>>
      %29 = tpu.memref_squeeze %28 : memref<1x!tpu.dma_semaphore, #tpu.memory_space<semaphore_mem>> -> memref<!tpu.dma_semaphore, #tpu.memory_space<semaphore_mem>>
      tpu.wait_dma2 semaphore(%29 : memref<!tpu.dma_semaphore, #tpu.memory_space<semaphore_mem>>) src(%26 : memref<1x64xf32, #tpu.memory_space<any>>) dst(%27 : memref<1x64xf32, #tpu.memory_space<vmem>>)
      %c1_i32_27 = arith.constant 1 : i32
      %c0_i32_28 = arith.constant 0 : i32
      %30 = tpu.memref_slice %arg2[%15, %c0_i32_28] : memref<256x64xf32, #tpu.memory_space<any>> -> memref<1x64xf32, #tpu.memory_space<any>>
      %c1_i32_29 = arith.constant 1 : i32
      %c0_i32_30 = arith.constant 0 : i32
      %31 = tpu.memref_slice %arg15[%c1_i32_29, %c0_i32_30] : memref<2x64xf32, #tpu.memory_space<vmem>> -> memref<1x64xf32, #tpu.memory_space<vmem>>
      %32 = tpu.memref_slice %arg16[%c1_i32_27] : memref<2x!tpu.dma_semaphore, #tpu.memory_space<semaphore_mem>> -> memref<1x!tpu.dma_semaphore, #tpu.memory_space<semaphore_mem>>
      %33 = tpu.memref_squeeze %32 : memref<1x!tpu.dma_semaphore, #tpu.memory_space<semaphore_mem>> -> memref<!tpu.dma_semaphore, #tpu.memory_space<semaphore_mem>>
      tpu.wait_dma2 semaphore(%33 : memref<!tpu.dma_semaphore, #tpu.memory_space<semaphore_mem>>) src(%30 : memref<1x64xf32, #tpu.memory_space<any>>) dst(%31 : memref<1x64xf32, #tpu.memory_space<vmem>>)
      %c0_31 = arith.constant 0 : index
      %c0_32 = arith.constant 0 : index
      %34 = vector.load %arg15[%c0_31, %c0_32] : memref<2x64xf32, #tpu.memory_space<vmem>>, vector<2x64xf32>
      %c0_33 = arith.constant 0 : index
      %c0_34 = arith.constant 0 : index
      %35 = vector.load %arg5[%c0_33, %c0_34] : memref<64x128xf32, #tpu.memory_space<vmem>>, vector<64x128xf32>
      %cst_35 = arith.constant dense<0.000000e+00> : vector<2x128xf32>
      %36 = tpu.matmul %34, %35, %cst_35 {dimension_numbers = #tpu.dot_dimension_numbers<[1], [0], [0], [1], [0, 0, 1, 1], [], []>} : vector<2x64xf32>, vector<64x128xf32>, vector<2x128xf32> -> vector<2x128xf32>
      %c0_36 = arith.constant 0 : index
      %c0_37 = arith.constant 0 : index
      %37 = vector.load %arg7[%c0_36, %c0_37] : memref<1x128xf32, #tpu.memory_space<vmem>>, vector<1x128xf32>
      %38 = vector.broadcast %37 : vector<1x128xf32> to vector<2x128xf32>
      %39 = arith.addf %36, %38 : vector<2x128xf32>
      %40 = vector.extract_strided_slice %39 {offsets = [0, 0], sizes = [2, 32], strides = [1, 1]} : vector<2x128xf32> to vector<2x32xf32>
      %41 = vector.extract_strided_slice %25 {offsets = [0, 0], sizes = [2, 32], strides = [1, 1]} : vector<2x128xf32> to vector<2x32xf32>
      %42 = arith.addf %40, %41 : vector<2x32xf32>
      %43 = arith.negf %42 : vector<2x32xf32>
      %44 = math.exp %43 : vector<2x32xf32>
      %cst_38 = arith.constant 1.000000e+00 : f32
      %45 = vector.broadcast %cst_38 : f32 to vector<2x32xf32>
      %46 = arith.addf %45, %44 : vector<2x32xf32>
      %47 = arith.divf %45, %46 : vector<2x32xf32>
      %48 = vector.extract_strided_slice %39 {offsets = [0, 32], sizes = [2, 32], strides = [1, 1]} : vector<2x128xf32> to vector<2x32xf32>
      %49 = vector.extract_strided_slice %25 {offsets = [0, 32], sizes = [2, 32], strides = [1, 1]} : vector<2x128xf32> to vector<2x32xf32>
      %50 = arith.addf %48, %49 : vector<2x32xf32>
      %51 = arith.negf %50 : vector<2x32xf32>
      %52 = math.exp %51 : vector<2x32xf32>
      %cst_39 = arith.constant 1.000000e+00 : f32
      %53 = vector.broadcast %cst_39 : f32 to vector<2x32xf32>
      %54 = arith.addf %53, %52 : vector<2x32xf32>
      %55 = arith.divf %53, %54 : vector<2x32xf32>
      %56 = vector.extract_strided_slice %39 {offsets = [0, 64], sizes = [2, 32], strides = [1, 1]} : vector<2x128xf32> to vector<2x32xf32>
      %57 = vector.extract_strided_slice %25 {offsets = [0, 64], sizes = [2, 32], strides = [1, 1]} : vector<2x128xf32> to vector<2x32xf32>
      %58 = arith.mulf %47, %57 : vector<2x32xf32>
      %59 = arith.addf %56, %58 : vector<2x32xf32>
      %60 = math.tanh %59 : vector<2x32xf32>
      %cst_40 = arith.constant 1.000000e+00 : f32
      %61 = vector.broadcast %cst_40 : f32 to vector<2x32xf32>
      %62 = arith.subf %61, %55 : vector<2x32xf32>
      %63 = arith.mulf %62, %60 : vector<2x32xf32>
      %64 = arith.mulf %55, %20 : vector<2x32xf32>
      %65 = arith.addf %63, %64 : vector<2x32xf32>
      %c0_41 = arith.constant 0 : index
      %c0_42 = arith.constant 0 : index
      %c0_43 = arith.constant 0 : index
      %66 = vector.load %arg4[%c0_41, %c0_42, %c0_43] : memref<2x8x32xf32, #tpu.memory_space<vmem>>, vector<2x8x32xf32>
      %67 = vector.shape_cast %65 : vector<2x32xf32> to vector<2x1x32xf32>
      %68 = vector.broadcast %67 : vector<2x1x32xf32> to vector<2x8x32xf32>
      %69 = arith.mulf %68, %66 : vector<2x8x32xf32>
      %cst_44 = arith.constant dense<0.000000e+00> : vector<2x8xf32>
      %70 = vector.multi_reduction <add>, %69, %cst_44 [2] : vector<2x8x32xf32> to vector<2x8xf32>
      %cst_45 = arith.constant dense<0xFF800000> : vector<2xf32>
      %71 = vector.multi_reduction <maximumf>, %70, %cst_45 [1] : vector<2x8xf32> to vector<2xf32>
      %72 = vector.shape_cast %71 : vector<2xf32> to vector<2x1xf32>
      %73 = vector.broadcast %72 : vector<2x1xf32> to vector<2x8xf32>
      %74 = arith.subf %70, %73 : vector<2x8xf32>
      %75 = math.exp %74 : vector<2x8xf32>
      %cst_46 = arith.constant dense<0.000000e+00> : vector<2xf32>
      %76 = vector.multi_reduction <add>, %75, %cst_46 [1] : vector<2x8xf32> to vector<2xf32>
      %77 = vector.shape_cast %76 : vector<2xf32> to vector<2x1xf32>
      %78 = tpu.reciprocal %77 {approx = true} : vector<2x1xf32> -> vector<2x1xf32>
      %79 = arith.mulf %77, %78 : vector<2x1xf32>
      %cst_47 = arith.constant 2.000000e+00 : f32
      %80 = vector.broadcast %cst_47 : f32 to vector<2x1xf32>
      %81 = arith.subf %80, %79 : vector<2x1xf32>
      %82 = arith.mulf %78, %81 : vector<2x1xf32>
      %83 = vector.broadcast %82 : vector<2x1xf32> to vector<2x8xf32>
      %84 = arith.mulf %75, %83 : vector<2x8xf32>
      %85 = vector.shape_cast %84 : vector<2x8xf32> to vector<2x1x8xf32>
      "tpu.trace_start"() <{level = 10 : i32, message = "bqk,bkh->bqh"}> : () -> ()
      %cst_48 = arith.constant dense<0.000000e+00> : vector<2x1x32xf32>
      %86 = tpu.matmul %85, %66, %cst_48 {dimension_numbers = #tpu.dot_dimension_numbers<[2], [1], [1], [2], [0, 0, 0, 1, 1, 2], [0], [0]>} : vector<2x1x8xf32>, vector<2x8x32xf32>, vector<2x1x32xf32> -> vector<2x1x32xf32>
      "tpu.trace_stop"() : () -> ()
      %87 = vector.shape_cast %86 : vector<2x1x32xf32> to vector<2x32xf32>
      %88 = tpu.concatenate %65, %87 in 1 : vector<2x32xf32>, vector<2x32xf32> -> vector<2x64xf32>
      %c0_49 = arith.constant 0 : index
      %c0_50 = arith.constant 0 : index
      %89 = vector.load %arg9[%c0_49, %c0_50] : memref<64x32xf32, #tpu.memory_space<vmem>>, vector<64x32xf32>
      %cst_51 = arith.constant dense<0.000000e+00> : vector<2x32xf32>
      %90 = tpu.matmul %88, %89, %cst_51 {dimension_numbers = #tpu.dot_dimension_numbers<[1], [0], [0], [1], [0, 0, 1, 1], [], []>} : vector<2x64xf32>, vector<64x32xf32>, vector<2x32xf32> -> vector<2x32xf32>
      %c0_52 = arith.constant 0 : index
      %c0_53 = arith.constant 0 : index
      %91 = vector.load %arg10[%c0_52, %c0_53] : memref<1x32xf32, #tpu.memory_space<vmem>>, vector<1x32xf32>
      %92 = vector.broadcast %91 : vector<1x32xf32> to vector<2x32xf32>
      %93 = arith.addf %90, %92 : vector<2x32xf32>
      %94 = math.tanh %93 : vector<2x32xf32>
      %c0_54 = arith.constant 0 : index
      %c0_55 = arith.constant 0 : index
      %95 = vector.load %arg17[%c0_54, %c0_55] : memref<2x32xf32, #tpu.memory_space<vmem>>, vector<2x32xf32>
      tpu.vector_store %arg17[%c0_54, %c0_55], %94 {strides = array<i32>} : memref<2x32xf32, #tpu.memory_space<vmem>>, vector<2x32xf32>,
      %c0_56 = arith.constant 0 : index
      %c0_57 = arith.constant 0 : index
      %96 = vector.load %arg14[%c0_56, %c0_57] : memref<2x32xf32, #tpu.memory_space<vmem>>, vector<2x32xf32>
      tpu.vector_store %arg14[%c0_56, %c0_57], %65 {strides = array<i32>} : memref<2x32xf32, #tpu.memory_space<vmem>>, vector<2x32xf32>,
    } else {
    }
    %c0 = arith.constant 0 : index
    %c0_1 = arith.constant 0 : index
    %3 = vector.load %arg17[%c0, %c0_1] : memref<2x32xf32, #tpu.memory_space<vmem>>, vector<2x32xf32>
    %c0_2 = arith.constant 0 : index
    %c0_3 = arith.constant 0 : index
    %4 = vector.load %arg11[%c0_2, %c0_3] : memref<32x128xf32, #tpu.memory_space<vmem>>, vector<32x128xf32>
    %cst = arith.constant dense<0.000000e+00> : vector<2x128xf32>
    %5 = tpu.matmul %3, %4, %cst {dimension_numbers = #tpu.dot_dimension_numbers<[1], [0], [0], [1], [0, 0, 1, 1], [], []>} : vector<2x32xf32>, vector<32x128xf32>, vector<2x128xf32> -> vector<2x128xf32>
    %c0_4 = arith.constant 0 : index
    %c0_5 = arith.constant 0 : index
    %6 = vector.load %arg12[%c0_4, %c0_5] : memref<1x128xf32, #tpu.memory_space<vmem>>, vector<1x128xf32>
    %7 = vector.broadcast %6 : vector<1x128xf32> to vector<2x128xf32>
    %8 = arith.addf %5, %7 : vector<2x128xf32>
    %c0_6 = arith.constant 0 : index
    %c0_7 = arith.constant 0 : index
    %9 = vector.load %arg13[%c0_6, %c0_7] : memref<2x128xf32, #tpu.memory_space<vmem>>, vector<2x128xf32>
    tpu.vector_store %arg13[%c0_6, %c0_7], %8 {strides = array<i32>} : memref<2x128xf32, #tpu.memory_space<vmem>>, vector<2x128xf32>,
    return
  }
  func.func @transform_1(%arg0: i32, %arg1: memref<2xi32, #tpu.memory_space<smem>>) -> (i32, i32) {
    %c0_i32 = arith.constant 0 : i32
    %c0_i32_0 = arith.constant 0 : i32
    %c0_i32_1 = arith.constant 0 : i32
    return %c0_i32, %c0_i32_0 : i32, i32
  }
  func.func @transform_2(%arg0: i32, %arg1: memref<2xi32, #tpu.memory_space<smem>>) -> (i32, i32, i32) {
    %c0_i32 = arith.constant 0 : i32
    %c0_i32_0 = arith.constant 0 : i32
    %c0_i32_1 = arith.constant 0 : i32
    %c0_i32_2 = arith.constant 0 : i32
    return %c0_i32, %c0_i32_0, %c0_i32_1 : i32, i32, i32
  }
  func.func @transform_3(%arg0: i32, %arg1: memref<2xi32, #tpu.memory_space<smem>>) -> (i32, i32) {
    %c0_i32 = arith.constant 0 : i32
    %c0_i32_0 = arith.constant 0 : i32
    %c0_i32_1 = arith.constant 0 : i32
    return %c0_i32, %c0_i32_0 : i32, i32
  }
  func.func @transform_4(%arg0: i32, %arg1: memref<2xi32, #tpu.memory_space<smem>>) -> (i32, i32) {
    %c0_i32 = arith.constant 0 : i32
    %c0_i32_0 = arith.constant 0 : i32
    %c0_i32_1 = arith.constant 0 : i32
    return %c0_i32, %c0_i32_0 : i32, i32
  }
  func.func @transform_5(%arg0: i32, %arg1: memref<2xi32, #tpu.memory_space<smem>>) -> (i32, i32) {
    %c0_i32 = arith.constant 0 : i32
    %c0_i32_0 = arith.constant 0 : i32
    %c0_i32_1 = arith.constant 0 : i32
    return %c0_i32, %c0_i32_0 : i32, i32
  }
  func.func @transform_6(%arg0: i32, %arg1: memref<2xi32, #tpu.memory_space<smem>>) -> (i32, i32) {
    %c0_i32 = arith.constant 0 : i32
    %c0_i32_0 = arith.constant 0 : i32
    %c0_i32_1 = arith.constant 0 : i32
    return %c0_i32, %c0_i32_0 : i32, i32
  }
  func.func @transform_7(%arg0: i32, %arg1: memref<2xi32, #tpu.memory_space<smem>>) -> (i32, i32) {
    %c0_i32 = arith.constant 0 : i32
    %c0_i32_0 = arith.constant 0 : i32
    %c0_i32_1 = arith.constant 0 : i32
    return %c0_i32, %c0_i32_0 : i32, i32
  }
  func.func @transform_8(%arg0: i32, %arg1: memref<2xi32, #tpu.memory_space<smem>>) -> (i32, i32) {
    %c0_i32 = arith.constant 0 : i32
    %c0_i32_0 = arith.constant 0 : i32
    %c0_i32_1 = arith.constant 0 : i32
    return %c0_i32, %c0_i32_0 : i32, i32
  }
  func.func @transform_9(%arg0: i32, %arg1: memref<2xi32, #tpu.memory_space<smem>>) -> (i32, i32) {
    %c0_i32 = arith.constant 0 : i32
    %c0_i32_0 = arith.constant 0 : i32
    return %c0_i32, %arg0 : i32, i32
  }
  func.func @transform_10(%arg0: i32, %arg1: memref<2xi32, #tpu.memory_space<smem>>) -> (i32, i32) {
    %c0_i32 = arith.constant 0 : i32
    %c0_i32_0 = arith.constant 0 : i32
    return %c0_i32, %arg0 : i32, i32
  }
  func.func @transform_11(%arg0: i32, %arg1: memref<2xi32, #tpu.memory_space<smem>>) -> (i32, i32) {
    %c0_i32 = arith.constant 0 : i32
    %c0_i32_0 = arith.constant 0 : i32
    return %c0_i32, %arg0 : i32, i32
  }
  func.func @transform_12(%arg0: i32, %arg1: memref<2xi32, #tpu.memory_space<smem>>) -> (i32, i32) {
    %c0_i32 = arith.constant 0 : i32
    %c0_i32_0 = arith.constant 0 : i32
    %c0_i32_1 = arith.constant 0 : i32
    return %c0_i32, %c0_i32_0 : i32, i32
  }
}

</mosaic_0001>

<bundles_post_ra>
// kernel: luong_attn_decoder_forward.1
= control target key start
LH: loop header
LB: loop body
LE: loop exit
PB: predicated region body
PF: predicated region fallthrough
CT: control target
= control target key end

     0   :  { %s2001_s0 = inlined_call_operand.vmem [shape: s32[2], index: 0, kind: input, shape index: {}]   ;;  %s2002_s1 = inlined_call_operand.vmem [shape: f32[256,64], index: 1, kind: input, shape index: {}]   ;;  %s2003_s2 = inlined_call_operand.vmem [shape: f32[2,32], index: 2, kind: input, shape index: {}]   ;;  %s2004_s3 = inlined_call_operand.vmem [shape: f32[2,8,32], index: 3, kind: input, shape index: {}]   ;;  %s2005_s4 = inlined_call_operand.vmem [shape: f32[64,128], index: 4, kind: input, shape index: {}]   ;;  %s2006_s5 = inlined_call_operand.vmem [shape: f32[32,128], index: 5, kind: input, shape index: {}]   ;;  %s2007_s6 = inlined_call_operand.vmem [shape: f32[1,128], index: 6, kind: input, shape index: {}]   ;;  %s2008_s7 = inlined_call_operand.vmem [shape: f32[1,128], index: 7, kind: input, shape index: {}]   ;;  %s2009_s8 = inlined_call_operand.vmem [shape: f32[64,32], index: 8, kind: input, shape index: {}]   ;;  %s2010_s9 = inlined_call_operand.vmem [shape: f32[1,32], index: 9, kind: input, shape index: {}]   ;;  %s2011_s10 = inlined_call_operand.vmem [shape: f32[32,256], index: 10, kind: input, shape index: {}]   ;;  %s2012_s11 = inlined_call_operand.vmem [shape: f32[1,256], index: 11, kind: input, shape index: {}]   ;;  %s2013_s12 = inlined_call_operand.vmem [shape: f32[2,256], index: 12, kind: output, shape index: {0}]   ;;  %s2014_s13 = inlined_call_operand.hbm [shape: f32[2,32], index: 13, kind: output, shape index: {1}]  }
   0x1   :  { %2015 = sst [smem:[#allocation16_spill]] %s2011_s10  ;;  %s19_s27 = sshll.u32 %s2001_s0, 4  ;;  %s20_s27 = int_to_ptr.vmem [resolvable:$true] %s19_s27 }
   0x2   :  { %s1597_s28 = scalar_lea.vmem %s20_s27, 16  ;;  %p1602_p1 = scmp.lt.s32.totalorder %s20_s27, %s20_s27 }
   0x3   :  { %p1598_p0 = scmp.ne.s32.totalorder %s20_s27, %s1597_s28  ;;  %p1603_p2 = scmp.lt.s32.totalorder %s1597_s28, %s1597_s28 }
   0x5   :  { %p1604_p3 = por %p1603_p2, %p1602_p1 }
   0x7   :  { %p1605_p4 = pnand %p1604_p3, %p1598_p0 }
   0x9   :  { %1608 = shalt.err (!%p1605_p4)  }
   0xa   :  { %s1669_s29 = smov [#allocation6]  }
   0xb   :  { %22 = dma.vmem_to_smem %s20_s27, 16, %s1669_s29, [#allocation5] }
   0xc   :  { %1647 = dma.done.wait [#allocation5], 16 }
   0xd   :  { %1648 = vsyncadd [#allocation5], 4294967280 }
   0xe   :  { %24 = sfence }
   0xf   :  { %25 = vsyncpa [#allocation9], 0  ;;  %s1755_s30 = smov 0   ;;  %s1757_s14 = smov 0  }
  0x10   :  { %s1759_s15 = smov 0  }
  0x11 LB: > { %s1771_s0 = sadd.s32 4294967295, %s1667_s15   ;;  %s1774_s16 = sadd.s32 1, %s1667_s15   ;;  %s1667_s15 = sphi %s1759_s15, %s2020_s15   ;;  %s1663_s14 = sphi %s1757_s14, %s2019_s14   ;;  %s1659_s30 = sphi %s1755_s30, %s2018_s30  }
  0x12   : > { %s203_s17 = ssub.s32 %s1667_s15, %s1774_s16  ;;  %s206_s18 = sadd.s32 1, %s1663_s14 }
  0x13   : > { %p204_p5 = scmp.eq.s32.totalorder %s203_s17, 0  ;;  %p213_p6 = scmp.ne.s32.totalorder %s1663_s14, %s1659_s30 }
  0x14   : > { %p214_p7 = scmp.eq.s32.totalorder %s1667_s15, 0  ;;  %p1375_p9 = scmp.ge.s32.totalorder %s1667_s15, 2 }
  0x15   : > { %s1783_s19 = scalar_select %p204_p5, %s1663_s14, %s206_s18  }
  0x16   : > { %p215_p8 = por %p214_p7, %p213_p6  ;;  %336 = sbr.rel (%p1375_p9) target bundleno = 41 (0x29), region = 48 }
  0x1d   : > { %339 = sbr.rel (!%p215_p8) target bundleno = 41 (0x29), region = 52  ;;  %s341_s20 = sand.u32 (%p215_p8), 1, %s1663_s14  }
  0x1e   : > { %s1377_s21 = sshll.u32 (%p215_p8), %s1667_s15, 3  ;;  %s1376_s22 = sshll.u32 (%p215_p8), %s341_s20, 5 }
  0x1f   : > { %s2016_s10 = sld [smem:[#allocation16_spill]] (%p215_p8)  ;;  %s343_s26 = scalar_lea.vmem (%p215_p8), [#allocation7], %s1376_s22 }
  0x25   : > { %s345_s25 = scalar_lea.vmem %s2016_s10, %s1377_s21 }
  0x26   : > { %v379_v0 = vld [vmem:[%s345_s25] sm:$0xff]  ;;  %v381_v1 = vld [vmem:[%s345_s25 + $0x10] sm:$0xff] }
  0x27   : > { %v383_v2 = vld [vmem:[%s345_s25 + $0x20] sm:$0xff]  ;;  %380 = vst [vmem:[%s343_s26] sm:$0xff] %v379_v0  ;;  %382 = vst [vmem:[%s343_s26 + $0x8] sm:$0xff] %v381_v1  ;;  %v385_v3 = vld [vmem:[%s345_s25 + $0x30] sm:$0xff] }
  0x28   : > { %384 = vst [vmem:[%s343_s26 + $0x10] sm:$0xff] %v383_v2  ;;  %386 = vst [vmem:[%s343_s26 + $0x18] sm:$0xff] %v385_v3 }
  0x29 PF: > { %p1378_p10 = scmp.ge.s32.totalorder %s1667_s15, 1  ;;  %p397_p11 = scmp.lt.s32.totalorder %s1667_s15, 3 }
  0x2b   : > { %p398_p12 = pnand %p1378_p10, %p397_p11 }
  0x2c   : > { %s404_s27 = sand.u32 (!%p398_p12), 1, %s1659_s30   ;;  %p445_p13 = scmp.lt.s32.totalorder (!%p398_p12), %s1771_s0, 1 }
  0x2d   : > { %401 = sbr.rel (%p398_p12) target bundleno = 2455 (0x997), region = 94  ;;  %s1379_s28 = sshll.u32 (!%p398_p12), %s404_s27, 5 }
  0x2e   : > { %s1808_s24 = scalar_lea.vmem (!%p398_p12), [#allocation7], %s1379_s28  ;;  %p1381_p0 = scmp.ne.s32.totalorder (!%p398_p12), %s1771_s0, 0 }
  0x34   : > { %s1796_s29 = scalar_select %p445_p13, %s1771_s0, 1 }
  0x35   : > { %455 = sbr.rel (%p1381_p0) target bundleno = 2228 (0x8b4), region = 102  ;;  %s456_s30 = sld [smem:[#allocation6]] (!%p1381_p0) }
  0x36   : > { %s1380_s21 = sshll.u32 %s1796_s29, 1 }
  0x37   : > { %s1806_s15 = scalar_lea.vmem %s2013_s12, %s1380_s21 }
  0x3b   : > { %s457_s27 = scalar_lea.vmem (!%p1381_p0), %s2002_s1, %s456_s30 }
  0x3c   : > { %v475_v4 = vld [vmem:[%s457_s27] sm:$0x1] }
  0x3d   : > { %476 = vst [vmem:[#allocation2] sm:$0x1] %v475_v4 }
  0x3e   : > { %501 = vsyncadd [#allocation3], 16  ;;  %s1382_s17 = sld [smem:[#allocation6 + $0x1]] }
  0x44   : > { %s503_s22 = scalar_lea.vmem %s2002_s1, %s1382_s17 }
  0x45   : > { %v523_v5 = vld [vmem:[%s503_s22] sm:$0x1] }
  0x46   : > { %524 = vst [vmem:[#allocation2 + $0x1] sm:$0x1] %v523_v5 }
  0x47   : > { %549 = vsyncadd [#allocation3 + $0x1], 16  ;;  %v551_v6 = vld [vmem:[%s2006_s5] sm:$0xff]  ;;  %v552_v7 = vld [vmem:[%s2006_s5 + $0x8] sm:$0xff]  ;;  %v1670_v8 = vmov 0.0|0.0   ;;  %vm1671_vm0 = vmmov 0  }
  0x48   : > { %1502 = vmatprep.subr.bf16.mxu1 %v1670_v8  ;;  %v1503_v9 = vpack.c.bf16 %v552_v7, %v551_v6  ;;  %v553_v10 = vld [vmem:[%s2006_s5 + $0x10] sm:$0xff]  ;;  %v554_v11 = vld [vmem:[%s2006_s5 + $0x18] sm:$0xff]  ;;  %v1672_v12 = vmov 0.0   ;;  %v1836_v14 = vld [vmem:[%s2003_s2] sm:$0x3]  ;;  %vm562_vm1 = vcmask 261120  }
  0x49   : > { %1440 = vmatprep.mubr.msk.f32.mxu1 %vm1671_vm0, %v1672_v12  ;;  %v1506_v13 = vpack.c.bf16 %v554_v11, %v553_v10  ;;  %v1383_v15 = vld [vmem:[%s2008_s7] ss:$0 sm:$0xff] }
  0x4a   : > { %1504 = vmatpush3.bf16.msra.mxu1 %v1503_v9 }
  0x4b   : > { %1505 = vmatprep.subr.bf16.mxu1 %v1670_v8 }
  0x4e   : > { %1507 = vmatpush3.bf16.msra.mxu1 %v1506_v13 }
  0x51   : > { %1441 = vmatmul.mubr.msk.f32.vlgmr.msra.gmra.mrb[0].mxu1 %vm562_vm1, %v1836_v14 }
 0x124   : > { %v632_v16 = vpop.f32.mrb[0].mxu1 }
 0x125   : > { %v633_v17 = vadd.f32 %v1383_v15, %v632_v16  ;;  %v1442_v18 = vpop.f32.mrb[1].mxu1 }
 0x126   : > { %1649 = dma.done.wait [#allocation3], 16 }
 0x127   : > { %1650 = vsyncadd [#allocation3], 4294967280 }
 0x128   : > { %1651 = dma.done.wait [#allocation3 + $0x1], 16 }
 0x129   : > { %1652 = vsyncadd [#allocation3 + $0x1], 4294967280  ;;  %1508 = vmatprep.subr.bf16.mxu1 %v1670_v8  ;;  %1459 = vmatprep.mubr.msk.f32.mxu1 %vm1671_vm0, %v1672_v12  ;;  %s1673_s22 = smov 64   ;;  %v642_v19 = vld [vmem:[%s2005_s4] sm:$0xff]  ;;  %v643_v20 = vld [vmem:[%s2005_s4 + $0x8] sm:$0xff]  ;;  %vm657_vm2 = vcmask 523264   ;;  %v766_v50 = vlaneseq }
 0x12a   : > { %739 = vrot.lane.b32.xlu0 %v633_v17, %s1673_s22  ;;  %1462 = vmatprep.subr.mxu0 %v1672_v12  ;;  %v644_v21 = vld [vmem:[%s2005_s4 + $0x10] sm:$0xff]  ;;  %v1509_v22 = vpack.c.bf16 %v643_v20, %v642_v19  ;;  %v645_v23 = vld [vmem:[%s2005_s4 + $0x18] sm:$0xff]  ;;  %v646_v25 = vld [vmem:[%s2005_s4 + $0x20] sm:$0xff]  ;;  %s1674_s17 = smov 32   ;;  %s1675_s18 = smov 96   ;;  %vm831_vm3 = vcmask 1041409  }
 0x12b   : > { %1464 = vmatprep.mubr.msk.f32.mxu0 %vm1671_vm0, %v1672_v12  ;;  %v1512_v24 = vpack.c.bf16 %v645_v23, %v644_v21  ;;  %v647_v26 = vld [vmem:[%s2005_s4 + $0x28] sm:$0xff]  ;;  %v648_v28 = vld [vmem:[%s2005_s4 + $0x30] sm:$0xff]  ;;  %v649_v29 = vld [vmem:[%s2005_s4 + $0x38] sm:$0xff]  ;;  %v1676_v48 = vmov 1966171168   ;;  %v1897_v53 = vshrl.u32 %v766_v50, 7 }
 0x12c   : > { %1510 = vmatpush3.bf16.msra.mxu1 %v1509_v22  ;;  %v1515_v27 = vpack.c.bf16 %v647_v26, %v646_v25  ;;  %v1518_v30 = vpack.c.bf16 %v649_v29, %v648_v28  ;;  %v641_v31 = vld [vmem:[#allocation2] sm:$0x3]  ;;  %v1893_v47 = vld [vmem:[%s2004_s3 + $0x8] sm:$0xff]  ;;  %v764_v49 = vunpack.c.l.s4 %v1676_v48  ;;  %v822_v13 = vand.u32 127, %v766_v50 }
 0x12d   : > { %1511 = vmatprep.subr.bf16.mxu1 %v1670_v8  ;;  %v1385_v32 = vld [vmem:[%s2007_s6] ss:$0 sm:$0xff]  ;;  %v787_v61 = vsub.s32 0, %v1897_v53  ;;  %vm834_vm4 = vcmask 58368   ;;  %v1677_v21 = vmov 0   ;;  %v845_v22 = vsub.s32 1, %v1897_v53 }
 0x12e   : > { %v760_v43 = vld [vmem:[%s2004_s3] sm:$0xff]  ;;  %v765_v52 = vunpack.c.0.s8 %v764_v49  ;;  %1582 = vset.pattern.permute.xlu1 %v1677_v21  ;;  %1581 = vset.pattern.permute.xlu0 %v1677_v21  ;;  %vm901_vm5 = vcmask 64512   ;;  %vm1154_vm6 = vcmask 254976  }
 0x12f   : > { %1463 = vmatpush3.msra.mxu0 %v760_v43 }
 0x130   : > { %1513 = vmatpush3.bf16.msra.mxu1 %v1512_v24  ;;  %1467 = vmatprep.subr.mxu0 %v1672_v12  ;;  %v768_v57 = vsub.s32 %v765_v52, %v1897_v53 }
 0x131   : > { %1514 = vmatprep.subr.bf16.mxu1 %v1670_v8 }
 0x134   : > { %1516 = vmatpush3.bf16.msra.mxu1 %v1515_v27 }
 0x135   : > { %1517 = vmatprep.subr.bf16.mxu1 %v1670_v8 }
 0x138   : > { %1519 = vmatpush3.bf16.msra.mxu1 %v1518_v30 }
 0x13b   : > { %1460 = vmatmul.mubr.msk.f32.vlgmr.msra.gmra.mrb[2].mxu1 %vm657_vm2, %v641_v31 }
 0x19c   : > { %v740_v40 = vpop.permute.xlu0 %739 }
 0x20e   : > { %v727_v33 = vpop.f32.mrb[2].mxu1 }
 0x20f   : > { %v728_v34 = vadd.f32 %v1385_v32, %v727_v33  ;;  %v1461_v35 = vpop.f32.mrb[3].mxu1 }
 0x211   : > { %v731_v36 = vadd.f32 %v728_v34, %v633_v17 }
 0x213   : > { %v1387_v37 = vmul.f32 -1.442695, %v731_v36 }
 0x215   : > { %1583 = vpow2.f32 %v1387_v37 }
 0x21f   : > { %v1584_v38 = vpop.eup %1583 }
 0x220   : > { %v735_v39 = vadd.f32 1.0, %v1584_v38 }
 0x222   : > { %1585 = vrcp.f32 %v735_v39 }
 0x22c   : > { %v1586_v41 = vpop.eup %1585 }
 0x22d   : > { %v742_v42 = vmul.f32 %v1586_v41, %v740_v40  ;;  %v749_v54 = vsub.f32 1.0, %v1586_v41 }
 0x22f   : > { %744 = vrot.lane.b32.xlu0 %v742_v42, %s1673_s22 }
 0x233   : > { %797 = vrot.lane.b32.xlu0 %v760_v43, %s1674_s17 }
 0x2a1   : > { %v745_v44 = vpop.permute.xlu0 %744 }
 0x2a2   : > { %v747_v45 = vadd.f32 %v745_v44, %v728_v34 }
 0x2a4   : > { %1587 = vtanh.f32 %v747_v45 }
 0x2a5   : > { %v798_v0 = vpop.permute.xlu0 %797 }
 0x2ae   : > { %v1588_v46 = vpop.eup %1587 }
 0x2af   : > { %751 = vrot.lane.b32.xlu1 %v1588_v46, %s1675_s18 }
 0x2b3   : > { %755 = vrot.lane.b32.xlu1 %v1836_v14, %s1674_s17  ;;  %v825_v14 = vsub.s32 %v822_v13, %v1897_v53  ;;  %v1065_v53 = vld [vmem:[%s2009_s8] sm:$0xff] }
 0x2b7   : > { %799 = vrot.lane.b32.xlu1 %v1893_v47, %s1674_s17 }
 0x321   : > { %v752_v51 = vpop.permute.xlu1 %751 }
 0x322   : > { %v754_v56 = vmul.f32 %v752_v51, %v749_v54  ;;  %v1067_v54 = vld [vmem:[%s2009_s8 + $0x10] sm:$0xff] }
 0x325   : > { %v756_v55 = vpop.permute.xlu1 %755 }
 0x326   : > { %v758_v58 = vmul.f32 %v1586_v41, %v756_v55 }
 0x328   : > { %v1900_v59 = vadd.f32 %v758_v58, %v754_v56  ;;  %v1068_v56 = vld [vmem:[%s2009_s8 + $0x18] sm:$0xff]  ;;  %v1070_v58 = vld [vmem:[%s2009_s8 + $0x28] sm:$0xff] }
 0x329   : > { %v800_v3 = vpop.permute.xlu1 %799 }
 0x32a   : > { %v769_v60 = vrot.slane %v1900_v59, %v768_v57 }
 0x32c   : > { %v777_v62 = vrot.slane %v769_v60, %v768_v57  ;;  %v770_v63 = vcombine.high %v769_v60, %v769_v60  ;;  %v1071_v60 = vld [vmem:[%s2009_s8 + $0x30] sm:$0xff] }
 0x32e   : > { %v788_v1 = vrot.slane %v777_v62, %v787_v61  ;;  %v784_v2 = vrot.slane %v770_v63, %v768_v57  ;;  %v1069_v57 = vld [vmem:[%s2009_s8 + $0x20] sm:$0xff] }
 0x330   : > { %v803_v4 = vmul.f32 %v798_v0, %v788_v1  ;;  %v792_v5 = vrot.slane %v784_v2, %v787_v61 }
 0x332   : > { %v804_v6 = vmul.f32 %v800_v3, %v792_v5  ;;  %807 = vrot.lane.b32.xlu0 %v803_v4, %s1675_s18 }
 0x334   : > { %809 = vrot.lane.b32.xlu1 %v804_v6, %s1675_s18 }
 0x3a4   : > { %v808_v7 = vpop.permute.xlu0 %807 }
 0x3a5   : > { %v813_v9 = vsel %vm562_vm1, %v808_v7, 0.0  ;;  %v1390_v7 = vld [vmem:[%s2010_s9] ss:$0 sm:$0xff] }
 0x3a6   : > { %v810_v10 = vpop.permute.xlu1 %809  ;;  %814 = vadd.xlane.f32.xlu0 %v813_v9 }
 0x3a7   : > { %v816_v11 = vsel %vm562_vm1, %v810_v10, 0.0 }
 0x3a8   : > { %817 = vadd.xlane.f32.xlu1 %v816_v11 }
 0x433   : > { %v815_v15 = vpop.xlane.xlu0 %814 }
 0x434   : > { %v826_v17 = vrot.slane %v815_v15, %v825_v14 }
 0x435   : > { %v818_v16 = vpop.xlane.xlu1 %817 }
 0x436   : > { %v830_v18 = vrot.slane %v818_v16, %v825_v14 }
 0x438   : > { %v832_v19 = vsel %vm831_vm3, %v830_v18, %v826_v17 }
 0x439   : > { %v835_v20 = vsel %vm834_vm4, %v832_v19, -inf }
 0x43a   : > { %836 = vmax.xlane.f32.xlu0 %v835_v20 }
 0x4c7   : > { %v837_v23 = vpop.xlane.xlu0 %836 }
 0x4c8   : > { %v842_v24 = vrot.slane %v837_v23, %v787_v61  ;;  %v846_v25 = vrot.slane %v837_v23, %v845_v22 }
 0x4ca   : > { %v849_v26 = vsub.f32 %v815_v15, %v842_v24  ;;  %v850_v27 = vsub.f32 %v818_v16, %v846_v25 }
 0x4cc   : > { %v851_v28 = vmul.f32 1.442695, %v849_v26  ;;  %v853_v29 = vmul.f32 1.442695, %v850_v27 }
 0x4ce   : > { %1589 = vpow2.f32 %v851_v28 }
 0x4cf   : > { %1591 = vpow2.f32 %v853_v29 }
 0x4d8   : > { %v1590_v30 = vpop.eup %1589 }
 0x4d9   : > { %v1592_v31 = vpop.eup %1591  ;;  %858 = vperm.xlu0 %1581, %v1590_v30  }
 0x4da   : > { %861 = vperm.xlu1 %1582, %v1592_v31  }
 0x558   : > { %v859_v32 = vpop.permute.xlu0 %858 }
 0x559   : > { %v862_v33 = vpop.permute.xlu1 %861  ;;  %v866_v34 = vrot.slane %v859_v32, %v825_v14 }
 0x55a   : > { %v870_v35 = vrot.slane %v862_v33, %v825_v14 }
 0x55c   : > { %v871_v36 = vsel %vm831_vm3, %v870_v35, %v866_v34 }
 0x55d   : > { %v873_v37 = vsel %vm834_vm4, %v871_v36, 0.0 }
 0x55e   : > { %874 = vadd.xlane.f32.xlu1 %v873_v37 }
 0x5eb   : > { %v875_v38 = vpop.xlane.xlu1 %874 }
 0x5ec   : > { %1593 = vrcp.f32 %v875_v38 }
 0x5f6   : > { %v1594_v39 = vpop.eup %1593 }
 0x5f7   : > { %v877_v40 = vmul.f32 %v1594_v39, %v875_v38 }
 0x5f9   : > { %v878_v41 = vsub.f32 2.0, %v877_v40 }
 0x5fb   : > { %v879_v42 = vmul.f32 %v1594_v39, %v878_v41 }
 0x5fd   : > { %v884_v43 = vrot.slane %v879_v42, %v787_v61  ;;  %v888_v45 = vrot.slane %v879_v42, %v845_v22  ;;  %v1072_v61 = vld [vmem:[%s2009_s8 + $0x38] sm:$0xff] }
 0x5fe   : > { %v1530_v62 = vpack.c.bf16 %v1072_v61, %v1071_v60 }
 0x5ff   : > { %v891_v44 = vmul.f32 %v1590_v30, %v884_v43  ;;  %v892_v46 = vmul.f32 %v1592_v31, %v888_v45 }
 0x601   : > { %895 = vperm.xlu0 %1581, %v891_v44  }
 0x605   : > { %976 = vperm.xlu0 %1581, %v892_v46  }
 0x609   : > { %1054 = vrot.lane.b32.xlu0 %v1900_v59, %s1675_s18  ;;  %v1527_v59 = vpack.c.bf16 %v1070_v58, %v1069_v57 }
 0x680   : > { %v896_v48 = vpop.permute.xlu0 %895 }
 0x681   : > { %v900_v49 = vrot.slane %v896_v48, %v825_v14 }
 0x683   : > { %1465 = vmatmul.mubr.msk.f32.vlgmr.msra.gmra.mrb[0].mxu0 %vm901_vm5, %v900_v49 }
 0x684   : > { %1468 = vmatpush3.msra.mxu0 %v1893_v47  ;;  %v977_v50 = vpop.permute.xlu0 %976  ;;  %1469 = vmatprep.mubr.msk.f32.mxu0 %vm1671_vm0, %v1672_v12  ;;  %v1066_v47 = vld [vmem:[%s2009_s8 + $0x8] sm:$0xff] }
 0x685   : > { %v981_v51 = vrot.slane %v977_v50, %v825_v14  ;;  %1520 = vmatprep.subr.bf16.mxu0 %v1670_v8  ;;  %v1521_v55 = vpack.c.bf16 %v1066_v47, %v1065_v53 }
 0x687   : > { %1470 = vmatmul.mubr.msk.f32.vlgmr.msra.gmra.mrb[2].mxu0 %vm901_vm5, %v981_v51 }
 0x688   : > { %v1055_v52 = vpop.permute.xlu0 %1054  ;;  %1488 = vmatprep.mubr.msk.f32.mxu0 %vm1671_vm0, %v1672_v12  ;;  %1522 = vmatpush3.bf16.msra.mxu0 %v1521_v55  ;;  %v1524_v12 = vpack.c.bf16 %v1068_v56, %v1067_v54 }
 0x689   : > { %1156 = vst.msk [vmem:[#allocation8] sm:$0x3] %vm1154_vm6, %v1055_v52  ;;  %1523 = vmatprep.subr.bf16.mxu0 %v1670_v8 }
 0x68c   : > { %1525 = vmatpush3.bf16.msra.mxu0 %v1524_v12 }
 0x68d   : > { %1526 = vmatprep.subr.bf16.mxu0 %v1670_v8 }
 0x690   : > { %1528 = vmatpush3.bf16.msra.mxu0 %v1527_v59 }
 0x691   : > { %1529 = vmatprep.subr.bf16.mxu0 %v1670_v8 }
 0x694   : > { %1531 = vmatpush3.bf16.msra.mxu0 %v1530_v62 }
 0x756   : > { %v970_v63 = vpop.f32.mrb[0].mxu0 }
 0x757   : > { %v1466_v0 = vpop.f32.mrb[1].mxu0 }
 0x75a   : > { %v1050_v1 = vpop.f32.mrb[2].mxu0 }
 0x75b   : > { %v1059_v2 = vrot.slane %v1050_v1, 7  ;;  %v1471_v3 = vpop.f32.mrb[3].mxu0 }
 0x75d   : > { %v1060_v4 = vsel %vm831_vm3, %v1059_v2, %v970_v63 }
 0x75e   : > { %1061 = vrot.lane.b32.xlu1 %v1060_v4, %s1674_s17 }
 0x7d0   : > { %v1062_v5 = vpop.permute.xlu1 %1061 }
 0x7d1   : > { %v1064_v6 = vsel %vm562_vm1, %v1055_v52, %v1062_v5 }
 0x7d2   : > { %1489 = vmatmul.mubr.msk.f32.vlgmr.msra.gmra.mrb[4].mxu0 %vm657_vm2, %v1064_v6 }
 0x8a5   : > { %v1149_v8 = vpop.f32.mrb[4].mxu0 }
 0x8a6   : > { %v1150_v9 = vadd.f32 %v1390_v7, %v1149_v8  ;;  %v1490_v10 = vpop.f32.mrb[5].mxu0 }
 0x8a8   : > { %1595 = vtanh.f32 %v1150_v9 }
 0x8b2   : > { %v1596_v11 = vpop.eup %1595 }
 0x8b3   : > { %1155 = vst.msk [vmem:[#allocation4] sm:$0x3] %vm1154_vm6, %v1596_v11 }
 0x8b4 PF: > { %v1158_v13 = vld [vmem:[%s1808_s24] sm:$0xff]  ;;  %v1159_v14 = vld [vmem:[%s1808_s24 + $0x8] sm:$0xff]  ;;  %v1160_v15 = vld [vmem:[%s1808_s24 + $0x10] sm:$0xff]  ;;  %v1678_v16 = vmov 0.0|0.0   ;;  %vm1679_vm7 = vmmov 0   ;;  %v1680_v19 = vmov 0.0  }
 0x8b5   : > { %1532 = vmatprep.subr.bf16.mxu0 %v1678_v16  ;;  %v1533_v17 = vpack.c.bf16 %v1159_v14, %v1158_v13  ;;  %v1161_v18 = vld [vmem:[%s1808_s24 + $0x18] sm:$0xff]  ;;  %1499 = vmatprep.mubr.msk.f32.mxu0 %vm1679_vm7, %v1680_v19  ;;  %vm1169_vm8 = vcmask 261120   ;;  %p1542_p1 = scmp.eq.s32.totalorder %s1771_s0, 1  ;;  %s1681_s17 = smov [#allocation8]  }
 0x8b6   : > { %v1536_v20 = vpack.c.bf16 %v1161_v18, %v1160_v15  ;;  %s1258_s27 = sshll.u32 %s1681_s17, 4  ;;  %s1259_s27 = int_to_ptr.vmem [resolvable:$true] %s1258_s27 }
 0x8b7   : > { %1534 = vmatpush3.bf16.msra.mxu0 %v1533_v17  ;;  %s1609_s18 = scalar_lea.vmem %s1259_s27, 32  ;;  %p1616_p5 = scmp.lt.s32.totalorder %s1259_s27, %s1259_s27 }
 0x8b8   : > { %1535 = vmatprep.subr.bf16.mxu0 %v1678_v16  ;;  %p1610_p2 = scmp.ne.s32.totalorder %s1259_s27, %s1609_s18  ;;  %p1617_p6 = scmp.lt.s32.totalorder %s1609_s18, %s1609_s18 }
 0x8ba   : > { %v1157_v21 = vld [vmem:[#allocation4] sm:$0x3]  ;;  %p1611_p3 = pnand %p1610_p2, %p1542_p1  ;;  %p1618_p7 = por %p1617_p6, %p1616_p5 }
 0x8bb   : > { %1537 = vmatpush3.bf16.msra.mxu0 %v1536_v20 }
 0x8bc   : > { %p1612_p4 = pneg %p1611_p3 }
 0x8be   : > { %1500 = vmatmul.mubr.msk.f32.vlgmr.msra.gmra.mrb[0].mxu0 %vm1169_vm8, %v1157_v21  ;;  %p1619_p8 = pnand %p1618_p7, %p1612_p4 }
 0x8c0   : > { %1622 = shalt.err (!%p1619_p8)
}
 0x8c1   : > { %s1623_s28 = scalar_lea.hbm %s2014_s13, 32 }
 0x8c2   : > { %p1624_p9 = scmp.ne.s32.totalorder %s2014_s13, %s1623_s28  ;;  %p1629_p12 = scmp.lt.u32.totalorder %s1623_s28, %s2014_s13 }
 0x8c4   : > { %p1625_p10 = pnand %p1624_p9, %p1542_p1 }
 0x8c6   : > { %p1626_p11 = pneg %p1625_p10 }
 0x8c8   : > { %p1631_p13 = pnand %p1629_p12, %p1626_p11 }
 0x8ca   : > { %1634 = shalt.err (!%p1631_p13)
}
 0x8cb   : > { %1539 = dma.vmem_to_hbm [thread:$0]  (%p1542_p1), %s1259_s27, 32, %s2014_s13, [#allocation9]  }
 0x8cc   : > { %s2017_s18 = scalar_lea.vmem %s2012_s11, %s1796_s29 }
 0x8cd   : > { %v1392_v22 = vld [vmem:[%s2017_s18] ss:$0 sm:$0xff] }
 0x991   : > { %v1239_v23 = vpop.f32.mrb[0].mxu0 }
 0x992   : > { %v1240_v24 = vadd.f32 %v1392_v22, %v1239_v23  ;;  %v1501_v25 = vpop.f32.mrb[1].mxu0 }
 0x994   : > { %1243 = vst [vmem:[%s1806_s15] sm:$0x3] %v1240_v24 }
 0x995   : > { %1654 = dma.done.wait (%p1542_p1), [#allocation9], 32  }
 0x996   : > { %1656 = vsyncadd (%p1542_p1), [#allocation9], 4294967264 }
 0x997 PF: > { %p28_p0 = scmp.ge.s32.totalorder %s1774_s16, 4   ;;  %s2018_s30 = smov %s1663_s14 }
 0x998   : > { %s2019_s14 = smov %s1783_s19  ;;  %s2020_s15 = smov %s1774_s16 }
 0x999   :  { %30 = sbr.rel (!%p28_p0) target bundleno = 17 (0x11), region = 234 }
 0x9a0   :  { %1278 = vsyncpa [#allocation9], 1 }
 0x9a1   :  { %1280 = vsyncpa [#allocation9 + $0x1], 1 }
 0x9a2   :  { %1281 = vsyncmov [#allocation3] }
 0x9a5   :  { %s1282_s29 = vpop.sfrf %1281 }
 0x9a6   :  { %p1398_p2 = scmp.ne.s32.totalorder %s1282_s29, 0 }
 0x9a8   :  { %1286 = shalt.err (%p1398_p2)  }
 0x9a9   :  { %1288 = vsyncmov [#allocation3 + $0x1] }
 0x9ac   :  { %s1289_s0 = vpop.sfrf %1288 }
 0x9ad   :  { %p1399_p1 = scmp.ne.s32.totalorder %s1289_s0, 0 }
 0x9af   :  { %1293 = shalt.err (%p1399_p1)  }

</bundles_post_ra>
